<compile_context>
chip_gen: v7x
topology: tpu7x:2x2x1
jax: 0.10.0
libtpu: 0.0.40
codegen_flags: <defaults>
</compile_context>

<pallas_src>
import jax
import jax.numpy as jnp
from jax.experimental import pallas as pl
from jax.experimental.pallas import tpu as pltpu

_MAX_TB = 2048              # batch-tile cap (rows)
_STEP_OVERHEAD_ROWS = 1024  # ~0.35us per grid step, expressed in row-equivalents


def fused_mlp_softmax_kernel(x_ref, w_ref, b_ref, o_ref):
    # Single fused linear: [tb, d_in] @ [d_in, d_out] + [1, d_out]
    logits = jnp.dot(x_ref[...], w_ref[...],
                     preferred_element_type=jnp.float32) + b_ref[...]
    # Numerically-stable softmax over the lane axis.
    m = jnp.max(logits, axis=-1, keepdims=True)
    e = jnp.exp(logits - m)
    denom = jnp.sum(e, axis=-1, keepdims=True)
    # Exact (Newton-refined) reciprocal: approx=True would break the 1e-5
    # sum-to-1 contract.
    o_ref[...] = (e * pl.reciprocal(denom, approx=False)).astype(o_ref.dtype)


def _round_up(x, m):
    return -(-x // m) * m


def _pick_batch_tile(B):
    """Return (tb, n_tiles). Minimizes padding waste + per-step overhead.

    For B >= 256 at least 2 grid tiles are produced so the 'parallel' batch
    axis can shard across both TensorCores on v7x.
    """
    if B < 256:
        return B, 1  # single full-batch tile (block dims == full array dims)

    cands = set()
    # "exact split" candidates: ceil(B/n) rounded up to a sublane multiple.
    for n in (2, 3, 4, 6, 8):
        tb = _round_up(-(-B // n), 8)
        if 8 <= tb <= _MAX_TB:
            cands.add(tb)
    # fixed power-of-two candidates that still give >= 2 tiles.
    for tb in (256, 512, 1024, 2048):
        if tb <= _round_up(-(-B // 2), 8):
            cands.add(tb)

    best_tb, best_cost = None, None
    for tb in sorted(cands, reverse=True):
        n_tiles = -(-B // tb)
        if n_tiles < 2:
            continue
        waste = n_tiles * tb - B
        cost = waste + n_tiles * _STEP_OVERHEAD_ROWS
        if best_cost is None or cost < best_cost:
            best_cost, best_tb = cost, tb
    n_tiles = -(-B // best_tb)
    return best_tb, n_tiles


def mlp_softmax(x, w1, b1, w2, b2):
    B, d_in = x.shape
    d_out = w2.shape[1]

    # ---- algebraic fusion of the two affine layers (exact up to f32
    # reassociation).  For repeated inference these would be precomputed once.
    w_fused = jnp.dot(w1, w2, preferred_element_type=jnp.float32)       # [d_in, d_out]
    b_fused = jnp.dot(b1, w2, preferred_element_type=jnp.float32) + b2  # [1, d_out]

    # ---- batch tiling (pad batch up to a multiple of the tile if needed) ----
    tb, n_tiles = _pick_batch_tile(B)
    Bp = n_tiles * tb
    xp = x if Bp == B else jnp.zeros((Bp, d_in), x.dtype).at[:B].set(x)

    # ---- explicit VMEM budget: double-buffered x/out tiles + resident W,b ----
    vmem_bytes = 4 * (2 * tb * d_in + 2 * tb * d_out
                      + 2 * d_in * d_out + 2 * d_out)
    vmem_limit = int(min(max(2 * vmem_bytes + (4 << 20), 16 << 20), 32 << 20))

    # ---- advisory cost estimate for the XLA scheduler ----
    flops = 2 * Bp * d_in * d_out
    bytes_accessed = 4 * (Bp * d_in + d_in * d_out + d_out + Bp * d_out)
    cost = pl.CostEstimate(flops=flops,
                           transcendentals=Bp * d_out,
                           bytes_accessed=bytes_accessed)

    out = pl.pallas_call(
        fused_mlp_softmax_kernel,
        out_shape=jax.ShapeDtypeStruct((Bp, d_out), jnp.float32),
        grid_spec=pltpu.PrefetchScalarGridSpec(
            num_scalar_prefetch=0,
            grid=(n_tiles,),
            in_specs=[
                pl.BlockSpec((tb, d_in), lambda i: (i, 0)),       # x tile
                pl.BlockSpec((d_in, d_out), lambda i: (0, 0)),    # fused W (resident)
                pl.BlockSpec((1, d_out), lambda i: (0, 0)),       # fused b (resident)
            ],
            out_specs=pl.BlockSpec((tb, d_out), lambda i: (i, 0)),
        ),
        compiler_params=pltpu.CompilerParams(
            dimension_semantics=("parallel",),   # shards tiles across v7x's 2 TCs
            vmem_limit_bytes=vmem_limit,
        ),
        cost_estimate=cost,
    )(xp, w_fused, b_fused)

    # slice away batch padding only if any was added (no lane padding anymore)
    return out if Bp == B else out[:B]


def reference(x, w1, b1, w2, b2):
    # Faithful two-stage reference matching the PyTorch module.
    h = x @ w1 + b1
    logits = h @ w2 + b2
    return jax.nn.softmax(logits, axis=-1)


if __name__ == "__main__":
    # Small shapes consistent with the module: batch=8, input_dim=32,
    # hidden_dim=64, output_dim=16.
    B, D_IN, H, D_OUT = 8, 32, 64, 16

    key = jax.random.PRNGKey(0)
    kx, kw1, kb1, kw2, kb2 = jax.random.split(key, 5)

    x = jax.random.normal(kx, (B, D_IN), dtype=jnp.float32)
    # Deterministic parameter init (uniform, roughly matching nn.Linear scale).
    w1 = jax.random.uniform(kw1, (D_IN, H), jnp.float32,
                            minval=-1.0, maxval=1.0) / jnp.sqrt(D_IN)
    b1 = jax.random.uniform(kb1, (1, H), jnp.float32,
                            minval=-1.0, maxval=1.0) / jnp.sqrt(D_IN)
    w2 = jax.random.uniform(kw2, (H, D_OUT), jnp.float32,
                            minval=-1.0, maxval=1.0) / jnp.sqrt(H)
    b2 = jax.random.uniform(kb2, (1, D_OUT), jnp.float32,
                            minval=-1.0, maxval=1.0) / jnp.sqrt(H)

    # --- primary check: small batch (single-tile path) ---
    out = mlp_softmax(x, w1, b1, w2, b2)
    jax.block_until_ready(out)
    ref = reference(x, w1, b1, w2, b2)
    assert out.shape == (B, D_OUT)
    assert jnp.allclose(out, ref, atol=1e-5, rtol=1e-5)
    assert jnp.allclose(jnp.sum(out, axis=-1), 1.0, atol=1e-5)

    # --- secondary check: tiled path (>=2 grid tiles, no padding: B=384 -> tb=192) ---
    B2 = 384
    x2 = jax.random.normal(jax.random.PRNGKey(1), (B2, D_IN), dtype=jnp.float32)
    out2 = mlp_softmax(x2, w1, b1, w2, b2)
    jax.block_until_ready(out2)
    ref2 = reference(x2, w1, b1, w2, b2)
    assert out2.shape == (B2, D_OUT)
    assert jnp.allclose(out2, ref2, atol=1e-5, rtol=1e-5)
    assert jnp.allclose(jnp.sum(out2, axis=-1), 1.0, atol=1e-5)

    # --- tertiary check: batch-padding path (B=600 -> tb=304, Bp=608) ---
    B3 = 600
    x3 = jax.random.normal(jax.random.PRNGKey(2), (B3, D_IN), dtype=jnp.float32)
    out3 = mlp_softmax(x3, w1, b1, w2, b2)
    jax.block_until_ready(out3)
    ref3 = reference(x3, w1, b1, w2, b2)
    assert out3.shape == (B3, D_OUT)
    assert jnp.allclose(out3, ref3, atol=1e-5, rtol=1e-5)

    print("KERNEL_OK")
</pallas_src>

<mosaic_0001>
module attributes {stable_mosaic.version = 11 : i64} {
  func.func @fused_mlp_softmax_kernel(%arg0: i32, %arg1: memref<8x32xf32, #tpu.memory_space<vmem>>, %arg2: memref<32x16xf32, #tpu.memory_space<vmem>>, %arg3: memref<1x16xf32, #tpu.memory_space<vmem>>, %arg4: memref<8x16xf32, #tpu.memory_space<vmem>>) attributes {dimension_semantics = [#tpu.dimension_semantics<parallel>], iteration_bounds = array<i64: 1>, scalar_prefetch = 0 : i64, scratch_operands = 0 : i64, tpu.core_type = #tpu.core_type<tc>, window_params = [{transform_indices = @transform_0, window_bounds = array<i64: 8, 32>}, {pipeline_mode = #tpu.pipeline_mode<synchronous>, transform_indices = @transform_1, window_bounds = array<i64: 32, 16>}, {pipeline_mode = #tpu.pipeline_mode<synchronous>, transform_indices = @transform_2, window_bounds = array<i64: 1, 16>}, {transform_indices = @transform_3, window_bounds = array<i64: 8, 16>}]} {
    %c0 = arith.constant 0 : index
    %c0_0 = arith.constant 0 : index
    %0 = vector.load %arg1[%c0, %c0_0] : memref<8x32xf32, #tpu.memory_space<vmem>>, vector<8x32xf32>
    %c0_1 = arith.constant 0 : index
    %c0_2 = arith.constant 0 : index
    %1 = vector.load %arg2[%c0_1, %c0_2] : memref<32x16xf32, #tpu.memory_space<vmem>>, vector<32x16xf32>
    %cst = arith.constant dense<0.000000e+00> : vector<8x16xf32>
    %2 = tpu.matmul %0, %1, %cst {dimension_numbers = #tpu.dot_dimension_numbers<[1], [0], [0], [1], [0, 0, 1, 1], [], []>} : vector<8x32xf32>, vector<32x16xf32>, vector<8x16xf32> -> vector<8x16xf32>
    %c0_3 = arith.constant 0 : index
    %c0_4 = arith.constant 0 : index
    %3 = vector.load %arg3[%c0_3, %c0_4] : memref<1x16xf32, #tpu.memory_space<vmem>>, vector<1x16xf32>
    %4 = vector.broadcast %3 : vector<1x16xf32> to vector<8x16xf32>
    %5 = arith.addf %2, %4 : vector<8x16xf32>
    %cst_5 = arith.constant dense<0xFF800000> : vector<8xf32>
    %6 = vector.multi_reduction <maximumf>, %5, %cst_5 [1] : vector<8x16xf32> to vector<8xf32>
    %7 = vector.shape_cast %6 : vector<8xf32> to vector<8x1xf32>
    %8 = vector.broadcast %7 : vector<8x1xf32> to vector<8x16xf32>
    %9 = arith.subf %5, %8 : vector<8x16xf32>
    %10 = math.exp %9 : vector<8x16xf32>
    %cst_6 = arith.constant dense<0.000000e+00> : vector<8xf32>
    %11 = vector.multi_reduction <add>, %10, %cst_6 [1] : vector<8x16xf32> to vector<8xf32>
    %12 = vector.shape_cast %11 : vector<8xf32> to vector<8x1xf32>
    %13 = tpu.reciprocal %12 : vector<8x1xf32> -> vector<8x1xf32>
    %14 = vector.broadcast %13 : vector<8x1xf32> to vector<8x16xf32>
    %15 = arith.mulf %10, %14 : vector<8x16xf32>
    %c0_7 = arith.constant 0 : index
    %c0_8 = arith.constant 0 : index
    %16 = vector.load %arg4[%c0_7, %c0_8] : memref<8x16xf32, #tpu.memory_space<vmem>>, vector<8x16xf32>
    tpu.vector_store %arg4[%c0_7, %c0_8], %15 {strides = array<i32>} : memref<8x16xf32, #tpu.memory_space<vmem>>, vector<8x16xf32>,
    return
  }
  func.func @transform_0(%arg0: i32) -> (i32, i32) {
    %c0_i32 = arith.constant 0 : i32
    %c0_i32_0 = arith.constant 0 : i32
    return %arg0, %c0_i32 : i32, i32
  }
  func.func @transform_1(%arg0: i32) -> (i32, i32) {
    %c0_i32 = arith.constant 0 : i32
    %c0_i32_0 = arith.constant 0 : i32
    %c0_i32_1 = arith.constant 0 : i32
    return %c0_i32, %c0_i32_0 : i32, i32
  }
  func.func @transform_2(%arg0: i32) -> (i32, i32) {
    %c0_i32 = arith.constant 0 : i32
    %c0_i32_0 = arith.constant 0 : i32
    %c0_i32_1 = arith.constant 0 : i32
    return %c0_i32, %c0_i32_0 : i32, i32
  }
  func.func @transform_3(%arg0: i32) -> (i32, i32) {
    %c0_i32 = arith.constant 0 : i32
    %c0_i32_0 = arith.constant 0 : i32
    return %arg0, %c0_i32 : i32, i32
  }
}

</mosaic_0001>

<bundles_post_ra>
// kernel: tpu_custom_call.1
= control target key start
LH: loop header
LB: loop body
LE: loop exit
PB: predicated region body
PF: predicated region fallthrough
CT: control target
= control target key end

     0   :  { %v184_v3 = vmov 0.0|0.0   ;;  %vm185_vm0 = vmmov 0   ;;  %v186_v6 = vmov 0.0   ;;  %s241_s0 = inlined_call_operand.vmem [shape: f32[8,32], index: 0, kind: input, shape index: {}]   ;;  %s242_s1 = inlined_call_operand.vmem [shape: f32[32,16], index: 1, kind: input, shape index: {}]   ;;  %s243_s2 = inlined_call_operand.vmem [shape: f32[1,16], index: 2, kind: input, shape index: {}]   ;;  %s244_s3 = inlined_call_operand.hbm [shape: f32[8,16], index: 3, kind: output, shape index: {}]  }
   0x1   :  { %v16_v0 = vld [vmem:[%s242_s1] sm:$0xff]  ;;  %v17_v1 = vld [vmem:[%s242_s1 + $0x8] sm:$0xff]  ;;  %v18_v2 = vld [vmem:[%s242_s1 + $0x10] sm:$0xff]  ;;  %146 = vmatprep.subr.bf16.mxu0 %v184_v3  ;;  %143 = vmatprep.mubr.msk.f32.mxu0 %vm185_vm0, %v186_v6 }
   0x2   :  { %v147_v4 = vpack.c.bf16 %v17_v1, %v16_v0  ;;  %v19_v5 = vld [vmem:[%s242_s1 + $0x18] sm:$0xff] }
   0x3   :  { %8 = vsyncpa [#allocation3], 0  ;;  %v150_v7 = vpack.c.bf16 %v19_v5, %v18_v2  ;;  %v15_v8 = vld [vmem:[%s241_s0] sm:$0xff]  ;;  %vm27_vm1 = vcmask 261120   ;;  %vm101_vm2 = vcmask 130048   ;;  %s187_s0 = smov [#allocation2]  }
   0x4   :  { %148 = vmatpush3.bf16.msra.mxu0 %v147_v4  ;;  %v128_v9 = vld [vmem:[%s243_s2] ss:$0 sm:$0xff]  ;;  %s120_s1 = sshll.u32 %s187_s0, 4  ;;  %s121_s1 = int_to_ptr.vmem [resolvable:$true] %s120_s1 }
   0x5   :  { %149 = vmatprep.subr.bf16.mxu0 %v184_v3  ;;  %s160_s2 = scalar_lea.vmem %s121_s1, 128  ;;  %p165_p1 = scmp.lt.s32.totalorder %s121_s1, %s121_s1 }
   0x6   :  { %p161_p0 = scmp.ne.s32.totalorder %s121_s1, %s160_s2  ;;  %p166_p2 = scmp.lt.s32.totalorder %s160_s2, %s160_s2 }
   0x8   :  { %151 = vmatpush3.bf16.msra.mxu0 %v150_v7  ;;  %p167_p3 = por %p166_p2, %p165_p1 }
   0xa   :  { %p168_p4 = pnand %p167_p3, %p161_p0 }
   0xb   :  { %144 = vmatmul.mubr.msk.f32.vlgmr.msra.gmra.mrb[0].mxu0 %vm27_vm1, %v15_v8 }
  0xde   :  { %v97_v10 = vpop.f32.mrb[0].mxu0 }
  0xdf   :  { %v98_v11 = vadd.f32 %v128_v9, %v97_v10  ;;  %v145_v12 = vpop.f32.mrb[1].mxu0 }
  0xe1   :  { %v102_v13 = vsel %vm101_vm2, %v98_v11, -inf }
  0xe2   :  { %103 = vmax.xlane.f32.xlu0 %v102_v13 }
 0x16f   :  { %v104_v14 = vpop.xlane.xlu0 %103 }
 0x170   :  { %v105_v15 = vsub.f32 %v98_v11, %v104_v14 }
 0x172   :  { %v106_v16 = vmul.f32 1.442695, %v105_v15 }
 0x174   :  { %156 = vpow2.f32 %v106_v16 }
 0x17e   :  { %v157_v17 = vpop.eup %156 }
 0x17f   :  { %v108_v18 = vsel %vm101_vm2, %v157_v17, 0.0 }
 0x180   :  { %109 = vadd.xlane.f32.xlu0 %v108_v18 }
 0x20d   :  { %v110_v19 = vpop.xlane.xlu0 %109 }
 0x20e   :  { %158 = vrcp.f32 %v110_v19 }
 0x218   :  { %v159_v20 = vpop.eup %158 }
 0x219   :  { %v112_v21 = vmul.f32 %v159_v20, %v157_v17 }
 0x21b   :  { %113 = vst.msk [vmem:[#allocation2] sm:$0xff] %vm101_vm2, %v112_v21 }
 0x21c   :  { %171 = shalt.err (!%p168_p4)
}
 0x21d   :  { %s172_s26 = scalar_lea.hbm %s244_s3, 128 }
 0x21e   :  { %p173_p5 = scmp.ne.s32.totalorder %s244_s3, %s172_s26  ;;  %p176_p6 = scmp.lt.u32.totalorder %s172_s26, %s244_s3 }
 0x220   :  { %p178_p7 = pnand %p176_p6, %p173_p5 }
 0x222   :  { %181 = shalt.err (!%p178_p7)
}
 0x223   :  { %123 = dma.vmem_to_hbm [thread:$0]  %s121_s1, 128, %s244_s3, [#allocation3]  }
 0x224   :  { %182 = dma.done.wait [#allocation3], 128  }
 0x225   :  { %183 = vsyncadd [#allocation3], 4294967168 }
 0x226   :  { %127 = vsyncpa [#allocation3], 1 }

</bundles_post_ra>
